<compile_context>
chip_gen: v5e
topology: v5e:2x2
jax: 0.10.0
libtpu: 0.0.40
codegen_flags: <defaults>
</compile_context>

<pallas_src>
import functools

import jax
import jax.numpy as jnp
from jax.experimental import pallas as pl
from jax.experimental.pallas import tpu as pltpu

LANE = 128     # vreg lane width
SUBLANE = 8    # vreg sublane count


def _round_up(x, m):
    return (x + m - 1) // m * m


def mlp_kernel(x_ref, w1_ref, b1_ref, w2_ref, b2_ref, w3_ref, b3_ref, o_ref):
    # x / weights arrive as bf16 (lane-dense, padded); accumulate in f32 on MXU.
    x = x_ref[...]

    h1 = jnp.dot(x, w1_ref[...], preferred_element_type=jnp.float32) + b1_ref[...]
    h1 = jnp.maximum(h1, 0.0).astype(jnp.bfloat16)

    h2 = jnp.dot(h1, w2_ref[...], preferred_element_type=jnp.float32) + b2_ref[...]
    h2 = jnp.maximum(h2, 0.0).astype(jnp.bfloat16)

    h3 = jnp.dot(h2, w3_ref[...], preferred_element_type=jnp.float32) + b3_ref[...]
    o_ref[...] = jnp.maximum(h3, 0.0).astype(o_ref.dtype)


def mlp_forward(x, params, *, block_batch=256):
    """3-layer MLP forward pass as a single batch-tiled Pallas kernel.

    x: [batch, in_dim] float32.  Weights stored as [in_features, out_features]
    (transpose of PyTorch nn.Linear.weight), biases as [1, out_features].
    Returns [batch, out_dim] float32.
    """
    w1, b1, w2, b2, w3, b3 = params
    batch, in_dim = x.shape
    h1_dim, h2_dim, out_dim = w1.shape[1], w2.shape[1], w3.shape[1]

    # ---- lane-dense padded dims -------------------------------------------
    in_p = _round_up(in_dim, LANE)
    h1_p = _round_up(h1_dim, LANE)
    h2_p = _round_up(h2_dim, LANE)
    out_p = _round_up(out_dim, LANE)

    # ---- batch tiling -------------------------------------------------------
    tb = min(block_batch, _round_up(batch, SUBLANE))
    batch_p = _round_up(batch, tb)
    num_tiles = batch_p // tb

    # ---- host-side pad + cast ----------------------------------------------
    def pad2(a, rows, cols, dtype):
        a = jnp.pad(a, ((0, rows - a.shape[0]), (0, cols - a.shape[1])))
        return a.astype(dtype)

    xp = pad2(x, batch_p, in_p, jnp.bfloat16)
    w1p = pad2(w1, in_p, h1_p, jnp.bfloat16)
    w2p = pad2(w2, h1_p, h2_p, jnp.bfloat16)
    w3p = pad2(w3, h2_p, out_p, jnp.bfloat16)
    b1p = pad2(b1, 1, h1_p, jnp.float32)
    b2p = pad2(b2, 1, h2_p, jnp.float32)
    b3p = pad2(b3, 1, out_p, jnp.float32)

    # ---- specs: x/out tiled over batch, weights/biases VMEM-resident --------
    x_spec = pl.BlockSpec((tb, in_p), lambda i: (i, 0))
    o_spec = pl.BlockSpec((tb, out_p), lambda i: (i, 0))
    resident = lambda shape: pl.BlockSpec(shape, lambda i: (0, 0))

    # ---- VMEM budget (explicit; stays well under v7x's 64 MiB/TC) -----------
    weight_bytes = (in_p * h1_p + h1_p * h2_p + h2_p * out_p) * 2 \
        + (h1_p + h2_p + out_p) * 4
    io_tile_bytes = 2 * (tb * in_p * 2) + 2 * (tb * out_p * 4)  # double-buffered
    interm_bytes = tb * (h1_p + h2_p + out_p) * 4 + tb * (h1_p + h2_p) * 2
    vmem_bytes = int(min(48 * 1024 * 1024,
                         max(4 * 1024 * 1024,
                             4 * (weight_bytes + io_tile_bytes + interm_bytes))))

    # ---- advisory cost estimate ---------------------------------------------
    flops = 2 * batch_p * (in_p * h1_p + h1_p * h2_p + h2_p * out_p)
    bytes_accessed = (batch_p * in_p * 2 + weight_bytes + batch_p * out_p * 4)
    cost = pl.CostEstimate(flops=flops, transcendentals=0,
                           bytes_accessed=bytes_accessed)

    out_padded = pl.pallas_call(
        mlp_kernel,
        out_shape=jax.ShapeDtypeStruct((batch_p, out_p), jnp.float32),
        grid=(num_tiles,),
        in_specs=[
            x_spec,
            resident(w1p.shape), resident(b1p.shape),
            resident(w2p.shape), resident(b2p.shape),
            resident(w3p.shape), resident(b3p.shape),
        ],
        out_specs=o_spec,
        compiler_params=pltpu.CompilerParams(
            dimension_semantics=("parallel",),   # v7x: shard batch over 2 TCs
            vmem_limit_bytes=vmem_bytes,
        ),
        cost_estimate=cost,
    )(xp, w1p, b1p, w2p, b2p, w3p, b3p)

    # Slice back to the real (un-padded) batch / output dims.
    return out_padded[:batch, :out_dim]


def init_params(key, in_dim, n_hidden_1, n_hidden_2, out_dim):
    """Deterministic init mimicking nn.Linear's U(-1/sqrt(fan_in), 1/sqrt(fan_in)).

    Weights stored transposed relative to PyTorch: [in_features, out_features].
    """
    ks = jax.random.split(key, 6)

    def linear(kw, kb, fan_in, fan_out):
        bound = 1.0 / jnp.sqrt(fan_in)
        w = jax.random.uniform(kw, (fan_in, fan_out), jnp.float32, -bound, bound)
        b = jax.random.uniform(kb, (1, fan_out), jnp.float32, -bound, bound)
        return w, b

    w1, b1 = linear(ks[0], ks[1], in_dim, n_hidden_1)
    w2, b2 = linear(ks[2], ks[3], n_hidden_1, n_hidden_2)
    w3, b3 = linear(ks[4], ks[5], n_hidden_2, out_dim)
    return (w1, b1, w2, b2, w3, b3)


def _reference(x, params):
    w1, b1, w2, b2, w3, b3 = params
    h = jnp.maximum(x @ w1 + b1, 0.0)
    h = jnp.maximum(h @ w2 + b2, 0.0)
    return jnp.maximum(h @ w3 + b3, 0.0)


if __name__ == "__main__":
    # Small shapes consistent with the module: Net(in_dim, h1, h2, out_dim).
    in_dim, n_hidden_1, n_hidden_2, out_dim = 32, 64, 32, 16

    key = jax.random.PRNGKey(0)
    k_x1, k_x2, k_p = jax.random.split(key, 3)
    params = init_params(k_p, in_dim, n_hidden_1, n_hidden_2, out_dim)

    fwd = jax.jit(functools.partial(mlp_forward, block_batch=256))

    # Case 1: tiny batch (single grid step).
    x1 = jax.random.normal(k_x1, (16, in_dim), jnp.float32)
    out1 = jax.block_until_ready(fwd(x1, params))
    ref1 = _reference(x1, params)
    assert out1.shape == (16, out_dim)
    assert jnp.allclose(out1, ref1, atol=5e-2, rtol=5e-2), "case 1 mismatch"

    # Case 2: non-multiple batch -> exercises batch padding + 2-step grid.
    x2 = jax.random.normal(k_x2, (300, in_dim), jnp.float32)
    out2 = jax.block_until_ready(fwd(x2, params))
    ref2 = _reference(x2, params)
    assert out2.shape == (300, out_dim)
    assert jnp.allclose(out2, ref2, atol=5e-2, rtol=5e-2), "case 2 mismatch"

    print("KERNEL_OK")
</pallas_src>

<mosaic_0001>
module attributes {stable_mosaic.version = 11 : i64} {
  func.func @mlp_kernel(%arg0: i32, %arg1: memref<16x128xbf16, #tpu.memory_space<vmem>>, %arg2: memref<128x128xbf16, #tpu.memory_space<vmem>>, %arg3: memref<1x128xf32, #tpu.memory_space<vmem>>, %arg4: memref<128x128xbf16, #tpu.memory_space<vmem>>, %arg5: memref<1x128xf32, #tpu.memory_space<vmem>>, %arg6: memref<128x128xbf16, #tpu.memory_space<vmem>>, %arg7: memref<1x128xf32, #tpu.memory_space<vmem>>, %arg8: memref<16x128xf32, #tpu.memory_space<vmem>>) attributes {dimension_semantics = [#tpu.dimension_semantics<parallel>], iteration_bounds = array<i64: 1>, scalar_prefetch = 0 : i64, scratch_operands = 0 : i64, tpu.core_type = #tpu.core_type<tc>, window_params = [{transform_indices = @transform_0, window_bounds = array<i64: 16, 128>}, {pipeline_mode = #tpu.pipeline_mode<synchronous>, transform_indices = @transform_1, window_bounds = array<i64: 128, 128>}, {pipeline_mode = #tpu.pipeline_mode<synchronous>, transform_indices = @transform_2, window_bounds = array<i64: 1, 128>}, {pipeline_mode = #tpu.pipeline_mode<synchronous>, transform_indices = @transform_3, window_bounds = array<i64: 128, 128>}, {pipeline_mode = #tpu.pipeline_mode<synchronous>, transform_indices = @transform_4, window_bounds = array<i64: 1, 128>}, {pipeline_mode = #tpu.pipeline_mode<synchronous>, transform_indices = @transform_5, window_bounds = array<i64: 128, 128>}, {pipeline_mode = #tpu.pipeline_mode<synchronous>, transform_indices = @transform_6, window_bounds = array<i64: 1, 128>}, {transform_indices = @transform_7, window_bounds = array<i64: 16, 128>}]} {
    %c0 = arith.constant 0 : index
    %c0_0 = arith.constant 0 : index
    %0 = vector.load %arg1[%c0, %c0_0] : memref<16x128xbf16, #tpu.memory_space<vmem>>, vector<16x128xbf16>
    %c0_1 = arith.constant 0 : index
    %c0_2 = arith.constant 0 : index
    %1 = vector.load %arg2[%c0_1, %c0_2] : memref<128x128xbf16, #tpu.memory_space<vmem>>, vector<128x128xbf16>
    %cst = arith.constant dense<0.000000e+00> : vector<16x128xf32>
    %2 = tpu.matmul %0, %1, %cst {dimension_numbers = #tpu.dot_dimension_numbers<[1], [0], [0], [1], [0, 0, 1, 1], [], []>} : vector<16x128xbf16>, vector<128x128xbf16>, vector<16x128xf32> -> vector<16x128xf32>
    %c0_3 = arith.constant 0 : index
    %c0_4 = arith.constant 0 : index
    %3 = vector.load %arg3[%c0_3, %c0_4] : memref<1x128xf32, #tpu.memory_space<vmem>>, vector<1x128xf32>
    %4 = vector.broadcast %3 : vector<1x128xf32> to vector<16x128xf32>
    %5 = arith.addf %2, %4 : vector<16x128xf32>
    %cst_5 = arith.constant 0.000000e+00 : f32
    %6 = vector.broadcast %cst_5 : f32 to vector<16x128xf32>
    %7 = arith.maximumf %5, %6 : vector<16x128xf32>
    %8 = arith.truncf %7 : vector<16x128xf32> to vector<16x128xbf16>
    %c0_6 = arith.constant 0 : index
    %c0_7 = arith.constant 0 : index
    %9 = vector.load %arg4[%c0_6, %c0_7] : memref<128x128xbf16, #tpu.memory_space<vmem>>, vector<128x128xbf16>
    %cst_8 = arith.constant dense<0.000000e+00> : vector<16x128xf32>
    %10 = tpu.matmul %8, %9, %cst_8 {dimension_numbers = #tpu.dot_dimension_numbers<[1], [0], [0], [1], [0, 0, 1, 1], [], []>} : vector<16x128xbf16>, vector<128x128xbf16>, vector<16x128xf32> -> vector<16x128xf32>
    %c0_9 = arith.constant 0 : index
    %c0_10 = arith.constant 0 : index
    %11 = vector.load %arg5[%c0_9, %c0_10] : memref<1x128xf32, #tpu.memory_space<vmem>>, vector<1x128xf32>
    %12 = vector.broadcast %11 : vector<1x128xf32> to vector<16x128xf32>
    %13 = arith.addf %10, %12 : vector<16x128xf32>
    %cst_11 = arith.constant 0.000000e+00 : f32
    %14 = vector.broadcast %cst_11 : f32 to vector<16x128xf32>
    %15 = arith.maximumf %13, %14 : vector<16x128xf32>
    %16 = arith.truncf %15 : vector<16x128xf32> to vector<16x128xbf16>
    %c0_12 = arith.constant 0 : index
    %c0_13 = arith.constant 0 : index
    %17 = vector.load %arg6[%c0_12, %c0_13] : memref<128x128xbf16, #tpu.memory_space<vmem>>, vector<128x128xbf16>
    %cst_14 = arith.constant dense<0.000000e+00> : vector<16x128xf32>
    %18 = tpu.matmul %16, %17, %cst_14 {dimension_numbers = #tpu.dot_dimension_numbers<[1], [0], [0], [1], [0, 0, 1, 1], [], []>} : vector<16x128xbf16>, vector<128x128xbf16>, vector<16x128xf32> -> vector<16x128xf32>
    %c0_15 = arith.constant 0 : index
    %c0_16 = arith.constant 0 : index
    %19 = vector.load %arg7[%c0_15, %c0_16] : memref<1x128xf32, #tpu.memory_space<vmem>>, vector<1x128xf32>
    %20 = vector.broadcast %19 : vector<1x128xf32> to vector<16x128xf32>
    %21 = arith.addf %18, %20 : vector<16x128xf32>
    %cst_17 = arith.constant 0.000000e+00 : f32
    %22 = vector.broadcast %cst_17 : f32 to vector<16x128xf32>
    %23 = arith.maximumf %21, %22 : vector<16x128xf32>
    %c0_18 = arith.constant 0 : index
    %c0_19 = arith.constant 0 : index
    %24 = vector.load %arg8[%c0_18, %c0_19] : memref<16x128xf32, #tpu.memory_space<vmem>>, vector<16x128xf32>
    tpu.vector_store %arg8[%c0_18, %c0_19], %23 {strides = array<i32>} : memref<16x128xf32, #tpu.memory_space<vmem>>, vector<16x128xf32>,
    return
  }
  func.func @transform_0(%arg0: i32) -> (i32, i32) {
    %c0_i32 = arith.constant 0 : i32
    %c0_i32_0 = arith.constant 0 : i32
    return %arg0, %c0_i32 : i32, i32
  }
  func.func @transform_1(%arg0: i32) -> (i32, i32) {
    %c0_i32 = arith.constant 0 : i32
    %c0_i32_0 = arith.constant 0 : i32
    %c0_i32_1 = arith.constant 0 : i32
    return %c0_i32, %c0_i32_0 : i32, i32
  }
  func.func @transform_2(%arg0: i32) -> (i32, i32) {
    %c0_i32 = arith.constant 0 : i32
    %c0_i32_0 = arith.constant 0 : i32
    %c0_i32_1 = arith.constant 0 : i32
    return %c0_i32, %c0_i32_0 : i32, i32
  }
  func.func @transform_3(%arg0: i32) -> (i32, i32) {
    %c0_i32 = arith.constant 0 : i32
    %c0_i32_0 = arith.constant 0 : i32
    %c0_i32_1 = arith.constant 0 : i32
    return %c0_i32, %c0_i32_0 : i32, i32
  }
  func.func @transform_4(%arg0: i32) -> (i32, i32) {
    %c0_i32 = arith.constant 0 : i32
    %c0_i32_0 = arith.constant 0 : i32
    %c0_i32_1 = arith.constant 0 : i32
    return %c0_i32, %c0_i32_0 : i32, i32
  }
  func.func @transform_5(%arg0: i32) -> (i32, i32) {
    %c0_i32 = arith.constant 0 : i32
    %c0_i32_0 = arith.constant 0 : i32
    %c0_i32_1 = arith.constant 0 : i32
    return %c0_i32, %c0_i32_0 : i32, i32
  }
  func.func @transform_6(%arg0: i32) -> (i32, i32) {
    %c0_i32 = arith.constant 0 : i32
    %c0_i32_0 = arith.constant 0 : i32
    %c0_i32_1 = arith.constant 0 : i32
    return %c0_i32, %c0_i32_0 : i32, i32
  }
  func.func @transform_7(%arg0: i32) -> (i32, i32) {
    %c0_i32 = arith.constant 0 : i32
    %c0_i32_0 = arith.constant 0 : i32
    return %arg0, %c0_i32 : i32, i32
  }
}

</mosaic_0001>

<bundles_post_ra>
// kernel: mlp_forward.1
= control target key start
LH: loop header
LB: loop body
LE: loop exit
PB: predicated region body
PF: predicated region fallthrough
CT: control target
= control target key end

     0   :  { %s596_s0 = inlined_call_operand.vmem [shape: bf16[16,128], index: 0, kind: input, shape index: {}]   ;;  %s597_s1 = inlined_call_operand.vmem [shape: bf16[128,128], index: 1, kind: input, shape index: {}]   ;;  %s598_s2 = inlined_call_operand.vmem [shape: f32[1,128], index: 2, kind: input, shape index: {}]   ;;  %s599_s3 = inlined_call_operand.vmem [shape: bf16[128,128], index: 3, kind: input, shape index: {}]   ;;  %s600_s4 = inlined_call_operand.vmem [shape: f32[1,128], index: 4, kind: input, shape index: {}]   ;;  %s601_s5 = inlined_call_operand.vmem [shape: bf16[128,128], index: 5, kind: input, shape index: {}]   ;;  %s602_s6 = inlined_call_operand.vmem [shape: f32[1,128], index: 6, kind: input, shape index: {}]   ;;  %s603_s7 = inlined_call_operand.hbm [shape: f32[16,128], index: 7, kind: output, shape index: {}]  }
   0x1   :  { %v417_v0 = vld [vmem:[%s597_s1 + $0x38] sm:$0xff]  ;;  %v416_v1 = vld [vmem:[%s597_s1 + $0x30] sm:$0xff] }
   0x2   :  { %103 = vmatpush.bf16.msra.mxu0 %v417_v0  ;;  %v425_v2 = vld [vmem:[%s599_s3 + $0x38] sm:$0xff]  ;;  %v424_v3 = vld [vmem:[%s599_s3 + $0x30] sm:$0xff] }
   0x3   :  { %188 = vmatpush.bf16.msra.mxu1 %v425_v2 }
   0x4   :  { %12 = vsyncpa [#allocation3], 0  ;;  %v415_v4 = vld [vmem:[%s597_s1 + $0x28] sm:$0xff]  ;;  %v414_v6 = vld [vmem:[%s597_s1 + $0x20] sm:$0xff]  ;;  %s468_s10 = smov 8  }
   0x5   :  { %v423_v5 = vld [vmem:[%s599_s3 + $0x28] sm:$0xff]  ;;  %v422_v7 = vld [vmem:[%s599_s3 + $0x20] sm:$0xff]  ;;  %v413_v8 = vld [vmem:[%s597_s1 + $0x18] sm:$0xff] }
   0x6   :  { %104 = vmatpush.bf16.msra.mxu0 %v416_v1  ;;  %v412_v9 = vld [vmem:[%s597_s1 + $0x10] sm:$0xff]  ;;  %v411_v10 = vld [vmem:[%s597_s1 + $0x8] sm:$0xff]  ;;  %v410_v11 = vld [vmem:[%s597_s1] sm:$0xff]  ;;  %s467_s1 = smov 128  }
   0x7   :  { %189 = vmatpush.bf16.msra.mxu1 %v424_v3  ;;  %v409_v12 = vld [vmem:[%s596_s0] sm:$0xff]  ;;  %v421_v13 = vld [vmem:[%s599_s3 + $0x18] sm:$0xff]  ;;  %v420_v14 = vld [vmem:[%s599_s3 + $0x10] sm:$0xff] }
   0x8   :  { %v419_v15 = vld [vmem:[%s599_s3 + $0x8] sm:$0xff]  ;;  %v418_v16 = vld [vmem:[%s599_s3] sm:$0xff]  ;;  %v433_v17 = vld [vmem:[%s601_s5 + $0x38] sm:$0xff] }
   0x9   :  { %273 = vmatpush.bf16.msra.mxu2 %v433_v17  ;;  %v432_v18 = vld [vmem:[%s601_s5 + $0x30] sm:$0xff]  ;;  %v431_v19 = vld [vmem:[%s601_s5 + $0x28] sm:$0xff]  ;;  %v430_v20 = vld [vmem:[%s601_s5 + $0x20] sm:$0xff] }
   0xa   :  { %105 = vmatpush.bf16.msra.mxu0 %v415_v4  ;;  %v437_v22 = vld [vmem:[%s598_s2] ss:$0 sm:$0xff]  ;;  %v429_v29 = vld [vmem:[%s601_s5 + $0x18] sm:$0xff]  ;;  %v428_v30 = vld [vmem:[%s601_s5 + $0x10] sm:$0xff] }
   0xb   :  { %190 = vmatpush.bf16.msra.mxu1 %v423_v5  ;;  %v427_v31 = vld [vmem:[%s601_s5 + $0x8] sm:$0xff]  ;;  %v426_v32 = vld [vmem:[%s601_s5] sm:$0xff]  ;;  %s466_s5 = smov [#allocation2]  }
   0xc   :  { %v438_v34 = vld [vmem:[%s600_s4] ss:$0 sm:$0xff]  ;;  %s295_s30 = sshll.u32 %s466_s5, 4  ;;  %s297_s4 = sshll.u32 %s603_s7, 4  ;;  %s296_s30 = int_to_ptr.vmem [resolvable:$true] %s295_s30  ;;  %s298_s4 = int_to_ptr.hbm [resolvable:$true] %s297_s4 }
   0xd   :  { %274 = vmatpush.bf16.msra.mxu2 %v432_v18  ;;  %v439_v41 = vld [vmem:[%s602_s6] ss:$0 sm:$0xff] }
   0xe   :  { %106 = vmatpush.bf16.msra.mxu0 %v414_v6 }
   0xf   :  { %191 = vmatpush.bf16.msra.mxu1 %v422_v7 }
  0x11   :  { %275 = vmatpush.bf16.msra.mxu2 %v431_v19 }
  0x12   :  { %107 = vmatpush.bf16.msra.mxu0 %v413_v8 }
  0x13   :  { %192 = vmatpush.bf16.msra.mxu1 %v421_v13 }
  0x15   :  { %276 = vmatpush.bf16.msra.mxu2 %v430_v20 }
  0x16   :  { %108 = vmatpush.bf16.msra.mxu0 %v412_v9 }
  0x17   :  { %193 = vmatpush.bf16.msra.mxu1 %v420_v14 }
  0x19   :  { %277 = vmatpush.bf16.msra.mxu2 %v429_v29 }
  0x1a   :  { %109 = vmatpush.bf16.msra.mxu0 %v411_v10 }
  0x1b   :  { %194 = vmatpush.bf16.msra.mxu1 %v419_v15 }
  0x1d   :  { %278 = vmatpush.bf16.msra.mxu2 %v428_v30 }
  0x1e   :  { %110 = vmatpush.bf16.msra.mxu0 %v410_v11 }
  0x1f   :  { %195 = vmatpush.bf16.msra.mxu1 %v418_v16 }
  0x21   :  { %111 = vmatmul.bf16.vlgmr.msra.gmra.mxu0 %v409_v12  ;;  %279 = vmatpush.bf16.msra.mxu2 %v427_v31 }
  0x25   :  { %280 = vmatpush.bf16.msra.mxu2 %v426_v32 }
  0x9e   :  { %v112_v21 = vpop.f32.mrf.mxu0 }
  0x9f   :  { %v113_v23 = vadd.f32 %v437_v22, %v112_v21 }
  0xa1   :  { %v117_v26 = vmax.f32 %v113_v23, 0.0 }
  0xa6   :  { %v114_v24 = vpop.f32.mrf.mxu0 }
  0xa7   :  { %v115_v25 = vadd.f32 %v437_v22, %v114_v24 }
  0xa9   :  { %v118_v27 = vmax.f32 %v115_v25, 0.0 }
  0xab   :  { %v119_v28 = vpack.c.bf16 %v118_v27, %v117_v26 }
  0xad   :  { %196 = vmatmul.bf16.vlgmr.msra.gmra.mxu1 %v119_v28 }
 0x12a   :  { %v197_v33 = vpop.f32.mrf.mxu1 }
 0x12b   :  { %v198_v35 = vadd.f32 %v438_v34, %v197_v33 }
 0x12d   :  { %v202_v38 = vmax.f32 %v198_v35, 0.0 }
 0x132   :  { %v199_v36 = vpop.f32.mrf.mxu1 }
 0x133   :  { %v200_v37 = vadd.f32 %v438_v34, %v199_v36 }
 0x135   :  { %v203_v39 = vmax.f32 %v200_v37, 0.0 }
 0x137   :  { %v204_v40 = vpack.c.bf16 %v203_v39, %v202_v38 }
 0x139   :  { %281 = vmatmul.bf16.vlgmr.msra.gmra.mxu2 %v204_v40 }
 0x1bc   :  { %v282_v42 = vpop.f32.mrf.mxu2 }
 0x1bd   :  { %v283_v43 = vadd.f32 %v439_v41, %v282_v42 }
 0x1bf   :  { %v287_v44 = vmax.f32 %v283_v43, 0.0 }
 0x1c1   :  { %289 = vst [vmem:[#allocation2] sm:$0xff] %v287_v44 }
 0x1c4   :  { %v284_v45 = vpop.f32.mrf.mxu2 }
 0x1c5   :  { %v285_v46 = vadd.f32 %v439_v41, %v284_v45 }
 0x1c7   :  { %v288_v47 = vmax.f32 %v285_v46, 0.0 }
 0x1c9   :  { %290 = vst [vmem:[#allocation2 + $0x8] sm:$0xff] %v288_v47 }
 0x1ca   :  { %303 = dma.vmem_to_hbm [thread:$0]  %s296_s30, 256, %s298_s4, [#allocation3], %s467_s1, %s467_s1, %s468_s10  }
 0x1cb   :  { %464 = dma.done.wait [#allocation3], 256  }
 0x1cc   :  { %465 = vsyncadd [#allocation3], 4294967040 }
 0x1cd   :  { %308 = vsyncpa [#allocation3], 1 }

</bundles_post_ra>
